<compile_context>
chip_gen: v6e
topology: v6e:2x2x1
jax: 0.10.0
libtpu: 0.0.40
codegen_flags: <defaults>
</compile_context>

<pallas_src>
import functools

import jax
import jax.numpy as jnp
from jax import lax
from jax.experimental import pallas as pl
from jax.experimental.pallas import tpu as pltpu


def _combo_reduce_kernel(x_ref, t_ref, out_ref,
                         acc_xt, acc_xpt, acc_ce,
                         *, alpha, eps, full_rows, lane_rem,
                         rows_tile, rows_sub, lane):
    # x_ref/t_ref: (rows_tile, lane) blocks of the flattened inputs/targets.
    # out_ref:     (1, 3, 8, lane) per-core partial-sum slabs.
    # acc_*:       (8, lane) f32 VMEM accumulators (persist across grid steps).
    core = pl.program_id(0)          # parallel axis (TensorCore split on v7x)
    step = pl.program_id(1)          # reduction axis over row tiles
    n_steps = pl.num_programs(1)

    n_sub = rows_tile // rows_sub
    one_m_alpha = 1.0 - alpha

    @pl.when(step == 0)
    def _init():
        acc_xt[...] = jnp.zeros_like(acc_xt)
        acc_xpt[...] = jnp.zeros_like(acc_xpt)
        acc_ce[...] = jnp.zeros_like(acc_ce)

    # NOTE: overshoot blocks of the 2-core split (block_idx beyond the last data
    # block) rely on Pallas clamping the out-of-range block index for the DMA,
    # while the validity mask below is computed from the UNCLAMPED block_idx, so
    # their contribution is exactly zero. Keep row0 derived from block_idx, never
    # from the (clamped) data.
    block_idx = core * n_steps + step
    is_interior = (block_idx + 1) * rows_tile <= full_rows

    @pl.when(is_interior)
    def _fast():
        # Every element of this block is valid: no iota, no compares, no selects.
        @pl.loop(0, n_sub)
        def _(c):
            r0 = pl.multiple_of(c * rows_sub, rows_sub)
            xs = x_ref[pl.ds(r0, rows_sub), :].astype(jnp.float32)
            ts = t_ref[pl.ds(r0, rows_sub), :].astype(jnp.float32)
            xr = xs.reshape(rows_sub // 8, 8, lane)
            tr = ts.reshape(rows_sub // 8, 8, lane)
            # Dice statistics use the *unclamped* inputs (matches reference order).
            acc_xt[...] += jnp.sum(xr * tr, axis=0)
            acc_xpt[...] += jnp.sum(xr + tr, axis=0)
            xc = jnp.clip(xr, eps, 1.0 - eps)
            ce = tr * jnp.log(xc) + one_m_alpha * (1.0 - tr) * jnp.log(1.0 - xc)
            acc_ce[...] += jnp.sum(ce, axis=0)

    @pl.when(jnp.logical_not(is_interior))
    def _masked():
        row0 = block_idx * rows_tile

        @pl.loop(0, n_sub)
        def _(c):
            r0 = pl.multiple_of(c * rows_sub, rows_sub)
            xs = x_ref[pl.ds(r0, rows_sub), :].astype(jnp.float32)
            ts = t_ref[pl.ds(r0, rows_sub), :].astype(jnp.float32)
            g_row = (row0 + r0
                     + lax.broadcasted_iota(jnp.int32, (rows_sub, lane), 0))
            if lane_rem == 0:
                mask = g_row < full_rows
            else:
                col = lax.broadcasted_iota(jnp.int32, (rows_sub, lane), 1)
                mask = (g_row < full_rows) | ((g_row == full_rows) & (col < lane_rem))
            xm = jnp.where(mask, xs, 0.0)
            tm = jnp.where(mask, ts, 0.0)
            xr = xm.reshape(rows_sub // 8, 8, lane)
            tr = tm.reshape(rows_sub // 8, 8, lane)
            mr = mask.reshape(rows_sub // 8, 8, lane)
            acc_xt[...] += jnp.sum(xr * tr, axis=0)
            acc_xpt[...] += jnp.sum(xr + tr, axis=0)
            xc = jnp.clip(xr, eps, 1.0 - eps)
            ce = tr * jnp.log(xc) + one_m_alpha * (1.0 - tr) * jnp.log(1.0 - xc)
            # The where on ce is required: masked elements would otherwise each
            # contribute (1 - alpha) * log(1 - eps).
            acc_ce[...] += jnp.sum(jnp.where(mr, ce, 0.0), axis=0)

    @pl.when(step == n_steps - 1)
    def _finalize():
        out_ref[0, 0] = acc_xt[...]
        out_ref[0, 1] = acc_xpt[...]
        out_ref[0, 2] = acc_ce[...]


def _round_up(x, m):
    return ((x + m - 1) // m) * m


def binary_combo_loss(inputs, targets, alpha=0.5, ce_ratio=0.5, smooth=1.0):
    """Pallas-TPU equivalent of BinaryComboLoss.forward(inputs, targets, smooth)."""
    eps = 1e-07
    x = inputs.reshape(-1)             # free reshape of a contiguous array
    t = targets.reshape(-1)
    n_elems = x.shape[0]

    lane = 128
    lane_rem = n_elems % lane
    full_rows = n_elems // lane
    n_rows = full_rows + (1 if lane_rem else 0)

    # --- tiling geometry -----------------------------------------------------
    ROWS_SUB = 512      # inner-loop chunk: 512*128 elems -> ~256 KiB f32 temporaries
    TARGET_ROWS = 2048  # pixel tile: 2048*128 = 256K elems = 1 MiB f32 per input block

    if n_rows > ROWS_SUB:
        rows_sub = ROWS_SUB
        n_rows_p = _round_up(n_rows, rows_sub)
        rows_tile = min(TARGET_ROWS, n_rows_p)
    else:
        rows_sub = max(8, _round_up(n_rows, 8))
        n_rows_p = rows_sub
        rows_tile = rows_sub

    pad_elems = n_rows_p * lane - n_elems
    if pad_elems:
        # Single cheap 1-D pad pass; padded elements are excluded by the in-kernel
        # mask (only boundary / overshoot blocks ever take the masked path).
        x = jnp.pad(x, (0, pad_elems))
        t = jnp.pad(t, (0, pad_elems))
    x2 = x.reshape(n_rows_p, lane)
    t2 = t.reshape(n_rows_p, lane)

    n_row_blocks = pl.cdiv(n_rows_p, rows_tile)
    num_cores = 2   # megacore split on v7x; a harmless serial outer loop on 1-TC chips
    steps = pl.cdiv(n_row_blocks, num_cores)
    grid = (num_cores, steps)

    kernel = functools.partial(
        _combo_reduce_kernel, alpha=float(alpha), eps=eps,
        full_rows=full_rows, lane_rem=lane_rem,
        rows_tile=rows_tile, rows_sub=rows_sub, lane=lane)

    itemsize = jnp.dtype(inputs.dtype).itemsize
    cost = pl.CostEstimate(
        flops=12 * n_elems,
        transcendentals=2 * n_elems,
        bytes_accessed=2 * n_elems * itemsize + num_cores * 3 * 8 * lane * 4)

    partials = pl.pallas_call(
        kernel,
        out_shape=jax.ShapeDtypeStruct((num_cores, 3, 8, lane), jnp.float32),
        grid_spec=pltpu.PrefetchScalarGridSpec(
            num_scalar_prefetch=0,
            grid=grid,
            in_specs=[
                pl.BlockSpec((rows_tile, lane), lambda i, j: (i * steps + j, 0)),
                pl.BlockSpec((rows_tile, lane), lambda i, j: (i * steps + j, 0)),
            ],
            out_specs=pl.BlockSpec((1, 3, 8, lane), lambda i, j: (i, 0, 0, 0)),
            scratch_shapes=[pltpu.VMEM((8, lane), jnp.float32)] * 3,
        ),
        # TODO(synk): on v7x, verify in xprof that the size-2 leading axis really
        # shards across both TensorCores; if not, switch it to pltpu.CORE_PARALLEL.
        compiler_params=pltpu.CompilerParams(
            dimension_semantics=("parallel", "arbitrary")),
        cost_estimate=cost,
    )(x2, t2)

    # Combine per-core partial slabs and finish with cheap scalar math.
    sums = jnp.sum(partials, axis=(0, 2, 3))       # (3,): [sum x*t, sum x + sum t, sum ce]
    s_xt, s_xpt, s_ce = sums[0], sums[1], sums[2]

    dice = (2.0 * s_xt + smooth) / (s_xpt + smooth)
    weighted_ce = (-alpha * s_ce) / n_elems         # mean of -(alpha * (...))
    combo = ce_ratio * weighted_ce - (1.0 - ce_ratio) * dice
    return combo


def _reference(inputs, targets, alpha=0.5, ce_ratio=0.5, smooth=1.0):
    eps = 1e-07
    x = inputs.reshape(-1).astype(jnp.float32)
    t = targets.reshape(-1).astype(jnp.float32)
    intersection = jnp.sum(x * t)
    dice = (2.0 * intersection + smooth) / (jnp.sum(x) + jnp.sum(t) + smooth)
    xc = jnp.clip(x, eps, 1.0 - eps)
    out = -(alpha * (t * jnp.log(xc)
                     + (1.0 - alpha) * (1.0 - t) * jnp.log(1.0 - xc)))
    weighted_ce = jnp.mean(out)
    return ce_ratio * weighted_ce - (1.0 - ce_ratio) * dice


if __name__ == "__main__":
    key = jax.random.PRNGKey(0)
    k1, k2 = jax.random.split(key)

    N, C, H, W = 2, 4, 16, 16
    inputs = jax.nn.sigmoid(jax.random.normal(k1, (N, C, H, W), jnp.float32))
    targets = (jax.random.uniform(k2, (N, C, H, W)) > 0.5).astype(jnp.float32)

    loss = binary_combo_loss(inputs, targets)
    loss = jax.block_until_ready(loss)

    ref = _reference(inputs, targets)
    assert jnp.allclose(loss, ref, atol=2e-5, rtol=2e-5), (loss, ref)

    print("KERNEL_OK")
</pallas_src>

<mosaic_0001>
module attributes {stable_mosaic.version = 11 : i64} {
  func.func @_combo_reduce_kernel(%arg0: i32, %arg1: i32, %arg2: memref<16x128xf32, #tpu.memory_space<vmem>>, %arg3: memref<16x128xf32, #tpu.memory_space<vmem>>, %arg4: memref<1x3x8x128xf32, #tpu.memory_space<vmem>>, %arg5: memref<8x128xf32, #tpu.memory_space<vmem>>, %arg6: memref<8x128xf32, #tpu.memory_space<vmem>>, %arg7: memref<8x128xf32, #tpu.memory_space<vmem>>) attributes {dimension_semantics = [#tpu.dimension_semantics<parallel>, #tpu.dimension_semantics<arbitrary>], iteration_bounds = array<i64: 2, 1>, scalar_prefetch = 0 : i64, scratch_operands = 3 : i64, tpu.core_type = #tpu.core_type<tc>, window_params = [{transform_indices = @transform_0, window_bounds = array<i64: 16, 128>}, {transform_indices = @transform_1, window_bounds = array<i64: 16, 128>}, {transform_indices = @transform_2, window_bounds = array<i64: 1, 3, 8, 128>}]} {
    %c0_i32 = arith.constant 0 : i32
    %0 = arith.cmpi eq, %arg1, %c0_i32 : i32
    %1 = arith.extui %0 : i1 to i32
    %c0_i32_0 = arith.constant 0 : i32
    %2 = arith.cmpi ne, %1, %c0_i32_0 : i32
    scf.if %2 {
      %cst = arith.constant 0.000000e+00 : f32
      %16 = vector.broadcast %cst : f32 to vector<8x128xf32>
      %c0 = arith.constant 0 : index
      %c0_7 = arith.constant 0 : index
      %17 = vector.load %arg5[%c0, %c0_7] : memref<8x128xf32, #tpu.memory_space<vmem>>, vector<8x128xf32>
      tpu.vector_store %arg5[%c0, %c0_7], %16 {strides = array<i32>} : memref<8x128xf32, #tpu.memory_space<vmem>>, vector<8x128xf32>,
      %cst_8 = arith.constant 0.000000e+00 : f32
      %18 = vector.broadcast %cst_8 : f32 to vector<8x128xf32>
      %c0_9 = arith.constant 0 : index
      %c0_10 = arith.constant 0 : index
      %19 = vector.load %arg6[%c0_9, %c0_10] : memref<8x128xf32, #tpu.memory_space<vmem>>, vector<8x128xf32>
      tpu.vector_store %arg6[%c0_9, %c0_10], %18 {strides = array<i32>} : memref<8x128xf32, #tpu.memory_space<vmem>>, vector<8x128xf32>,
      %cst_11 = arith.constant 0.000000e+00 : f32
      %20 = vector.broadcast %cst_11 : f32 to vector<8x128xf32>
      %c0_12 = arith.constant 0 : index
      %c0_13 = arith.constant 0 : index
      %21 = vector.load %arg7[%c0_12, %c0_13] : memref<8x128xf32, #tpu.memory_space<vmem>>, vector<8x128xf32>
      tpu.vector_store %arg7[%c0_12, %c0_13], %20 {strides = array<i32>} : memref<8x128xf32, #tpu.memory_space<vmem>>, vector<8x128xf32>,
    } else {
    }
    %c1_i32 = arith.constant 1 : i32
    %3 = arith.muli %arg0, %c1_i32 : i32
    %4 = arith.addi %3, %arg1 : i32
    %c1_i32_1 = arith.constant 1 : i32
    %5 = arith.addi %4, %c1_i32_1 : i32
    %c16_i32 = arith.constant 16 : i32
    %6 = arith.muli %5, %c16_i32 : i32
    %c16_i32_2 = arith.constant 16 : i32
    %7 = arith.cmpi sle, %6, %c16_i32_2 : i32
    %8 = arith.extui %7 : i1 to i32
    %c0_i32_3 = arith.constant 0 : i32
    %9 = arith.cmpi ne, %8, %c0_i32_3 : i32
    scf.if %9 {
      %c0_i32_7 = arith.constant 0 : i32
      %c1_i32_8 = arith.constant 1 : i32
      %16 = arith.muli %c0_i32_7, %c1_i32_8 : i32
      %c0_i32_9 = arith.constant 0 : i32
      %17 = arith.addi %c0_i32_9, %16 : i32
      %c16_i32_10 = arith.constant 16 : i32
      %18 = arith.muli %17, %c16_i32_10 : i32
      %19 = tpu.assume_multiple %18, 16 : i32
      %20 = arith.index_cast %19 : i32 to index
      %c0 = arith.constant 0 : index
      %21 = vector.load %arg2[%20, %c0] : memref<16x128xf32, #tpu.memory_space<vmem>>, vector<16x128xf32>
      %22 = arith.index_cast %19 : i32 to index
      %c0_11 = arith.constant 0 : index
      %23 = vector.load %arg3[%22, %c0_11] : memref<16x128xf32, #tpu.memory_space<vmem>>, vector<16x128xf32>
      %24 = vector.shape_cast %21 : vector<16x128xf32> to vector<2x8x128xf32>
      %25 = vector.shape_cast %23 : vector<16x128xf32> to vector<2x8x128xf32>
      %c0_12 = arith.constant 0 : index
      %c0_13 = arith.constant 0 : index
      %26 = vector.load %arg5[%c0_12, %c0_13] : memref<8x128xf32, #tpu.memory_space<vmem>>, vector<8x128xf32>
      %27 = arith.mulf %24, %25 : vector<2x8x128xf32>
      %cst = arith.constant dense<0.000000e+00> : vector<8x128xf32>
      %28 = vector.multi_reduction <add>, %27, %cst [0] : vector<2x8x128xf32> to vector<8x128xf32>
      %29 = arith.addf %26, %28 : vector<8x128xf32>
      %c0_14 = arith.constant 0 : index
      %c0_15 = arith.constant 0 : index
      %30 = vector.load %arg5[%c0_14, %c0_15] : memref<8x128xf32, #tpu.memory_space<vmem>>, vector<8x128xf32>
      tpu.vector_store %arg5[%c0_14, %c0_15], %29 {strides = array<i32>} : memref<8x128xf32, #tpu.memory_space<vmem>>, vector<8x128xf32>,
      %c0_16 = arith.constant 0 : index
      %c0_17 = arith.constant 0 : index
      %31 = vector.load %arg6[%c0_16, %c0_17] : memref<8x128xf32, #tpu.memory_space<vmem>>, vector<8x128xf32>
      %32 = arith.addf %24, %25 : vector<2x8x128xf32>
      %cst_18 = arith.constant dense<0.000000e+00> : vector<8x128xf32>
      %33 = vector.multi_reduction <add>, %32, %cst_18 [0] : vector<2x8x128xf32> to vector<8x128xf32>
      %34 = arith.addf %31, %33 : vector<8x128xf32>
      %c0_19 = arith.constant 0 : index
      %c0_20 = arith.constant 0 : index
      %35 = vector.load %arg6[%c0_19, %c0_20] : memref<8x128xf32, #tpu.memory_space<vmem>>, vector<8x128xf32>
      tpu.vector_store %arg6[%c0_19, %c0_20], %34 {strides = array<i32>} : memref<8x128xf32, #tpu.memory_space<vmem>>, vector<8x128xf32>,
      %cst_21 = arith.constant 1.000000e-07 : f32
      %cst_22 = arith.constant 0.99999988 : f32
      %36 = vector.broadcast %cst_21 : f32 to vector<2x8x128xf32>
      %37 = arith.maximumf %36, %24 : vector<2x8x128xf32>
      %38 = vector.broadcast %cst_22 : f32 to vector<2x8x128xf32>
      %39 = arith.minimumf %38, %37 : vector<2x8x128xf32>
      %40 = math.log %39 : vector<2x8x128xf32>
      %41 = arith.mulf %25, %40 : vector<2x8x128xf32>
      %cst_23 = arith.constant 1.000000e+00 : f32
      %42 = vector.broadcast %cst_23 : f32 to vector<2x8x128xf32>
      %43 = arith.subf %42, %25 : vector<2x8x128xf32>
      %cst_24 = arith.constant 5.000000e-01 : f32
      %44 = vector.broadcast %cst_24 : f32 to vector<2x8x128xf32>
      %45 = arith.mulf %44, %43 : vector<2x8x128xf32>
      %cst_25 = arith.constant 1.000000e+00 : f32
      %46 = vector.broadcast %cst_25 : f32 to vector<2x8x128xf32>
      %47 = arith.subf %46, %39 : vector<2x8x128xf32>
      %48 = math.log %47 : vector<2x8x128xf32>
      %49 = arith.mulf %45, %48 : vector<2x8x128xf32>
      %50 = arith.addf %41, %49 : vector<2x8x128xf32>
      %c0_26 = arith.constant 0 : index
      %c0_27 = arith.constant 0 : index
      %51 = vector.load %arg7[%c0_26, %c0_27] : memref<8x128xf32, #tpu.memory_space<vmem>>, vector<8x128xf32>
      %cst_28 = arith.constant dense<0.000000e+00> : vector<8x128xf32>
      %52 = vector.multi_reduction <add>, %50, %cst_28 [0] : vector<2x8x128xf32> to vector<8x128xf32>
      %53 = arith.addf %51, %52 : vector<8x128xf32>
      %c0_29 = arith.constant 0 : index
      %c0_30 = arith.constant 0 : index
      %54 = vector.load %arg7[%c0_29, %c0_30] : memref<8x128xf32, #tpu.memory_space<vmem>>, vector<8x128xf32>
      tpu.vector_store %arg7[%c0_29, %c0_30], %53 {strides = array<i32>} : memref<8x128xf32, #tpu.memory_space<vmem>>, vector<8x128xf32>,
      %c1_i32_31 = arith.constant 1 : i32
    } else {
    }
    %true = arith.constant true
    %10 = arith.xori %7, %true : i1
    %11 = arith.extui %10 : i1 to i32
    %c0_i32_4 = arith.constant 0 : i32
    %12 = arith.cmpi ne, %11, %c0_i32_4 : i32
    scf.if %12 {
      %c16_i32_7 = arith.constant 16 : i32
      %16 = arith.muli %4, %c16_i32_7 : i32
      %c0_i32_8 = arith.constant 0 : i32
      %c1_i32_9 = arith.constant 1 : i32
      %17 = arith.muli %c0_i32_8, %c1_i32_9 : i32
      %c0_i32_10 = arith.constant 0 : i32
      %18 = arith.addi %c0_i32_10, %17 : i32
      %c16_i32_11 = arith.constant 16 : i32
      %19 = arith.muli %18, %c16_i32_11 : i32
      %20 = tpu.assume_multiple %19, 16 : i32
      %21 = arith.index_cast %20 : i32 to index
      %c0 = arith.constant 0 : index
      %22 = vector.load %arg2[%21, %c0] : memref<16x128xf32, #tpu.memory_space<vmem>>, vector<16x128xf32>
      %23 = arith.index_cast %20 : i32 to index
      %c0_12 = arith.constant 0 : index
      %24 = vector.load %arg3[%23, %c0_12] : memref<16x128xf32, #tpu.memory_space<vmem>>, vector<16x128xf32>
      %25 = arith.addi %16, %20 : i32
      %26 = tpu.iota {dimensions = array<i32: 0>} : vector<16x128xi32>
      %27 = vector.broadcast %25 : i32 to vector<16x128xi32>
      %28 = arith.addi %27, %26 : vector<16x128xi32>
      %c16_i32_13 = arith.constant 16 : i32
      %29 = vector.broadcast %c16_i32_13 : i32 to vector<16x128xi32>
      %30 = arith.cmpi slt, %28, %29 : vector<16x128xi32>
      %cst = arith.constant 0.000000e+00 : f32
      %31 = vector.broadcast %cst : f32 to vector<16x128xf32>
      %32 = arith.select %30, %22, %31 : vector<16x128xi1>, vector<16x128xf32>
      %cst_14 = arith.constant 0.000000e+00 : f32
      %33 = vector.broadcast %cst_14 : f32 to vector<16x128xf32>
      %34 = arith.select %30, %24, %33 : vector<16x128xi1>, vector<16x128xf32>
      %35 = vector.shape_cast %32 : vector<16x128xf32> to vector<2x8x128xf32>
      %36 = vector.shape_cast %34 : vector<16x128xf32> to vector<2x8x128xf32>
      %37 = vector.shape_cast %30 : vector<16x128xi1> to vector<2x8x128xi1>
      %c0_15 = arith.constant 0 : index
      %c0_16 = arith.constant 0 : index
      %38 = vector.load %arg5[%c0_15, %c0_16] : memref<8x128xf32, #tpu.memory_space<vmem>>, vector<8x128xf32>
      %39 = arith.mulf %35, %36 : vector<2x8x128xf32>
      %cst_17 = arith.constant dense<0.000000e+00> : vector<8x128xf32>
      %40 = vector.multi_reduction <add>, %39, %cst_17 [0] : vector<2x8x128xf32> to vector<8x128xf32>
      %41 = arith.addf %38, %40 : vector<8x128xf32>
      %c0_18 = arith.constant 0 : index
      %c0_19 = arith.constant 0 : index
      %42 = vector.load %arg5[%c0_18, %c0_19] : memref<8x128xf32, #tpu.memory_space<vmem>>, vector<8x128xf32>
      tpu.vector_store %arg5[%c0_18, %c0_19], %41 {strides = array<i32>} : memref<8x128xf32, #tpu.memory_space<vmem>>, vector<8x128xf32>,
      %c0_20 = arith.constant 0 : index
      %c0_21 = arith.constant 0 : index
      %43 = vector.load %arg6[%c0_20, %c0_21] : memref<8x128xf32, #tpu.memory_space<vmem>>, vector<8x128xf32>
      %44 = arith.addf %35, %36 : vector<2x8x128xf32>
      %cst_22 = arith.constant dense<0.000000e+00> : vector<8x128xf32>
      %45 = vector.multi_reduction <add>, %44, %cst_22 [0] : vector<2x8x128xf32> to vector<8x128xf32>
      %46 = arith.addf %43, %45 : vector<8x128xf32>
      %c0_23 = arith.constant 0 : index
      %c0_24 = arith.constant 0 : index
      %47 = vector.load %arg6[%c0_23, %c0_24] : memref<8x128xf32, #tpu.memory_space<vmem>>, vector<8x128xf32>
      tpu.vector_store %arg6[%c0_23, %c0_24], %46 {strides = array<i32>} : memref<8x128xf32, #tpu.memory_space<vmem>>, vector<8x128xf32>,
      %cst_25 = arith.constant 1.000000e-07 : f32
      %cst_26 = arith.constant 0.99999988 : f32
      %48 = vector.broadcast %cst_25 : f32 to vector<2x8x128xf32>
      %49 = arith.maximumf %48, %35 : vector<2x8x128xf32>
      %50 = vector.broadcast %cst_26 : f32 to vector<2x8x128xf32>
      %51 = arith.minimumf %50, %49 : vector<2x8x128xf32>
      %52 = math.log %51 : vector<2x8x128xf32>
      %53 = arith.mulf %36, %52 : vector<2x8x128xf32>
      %cst_27 = arith.constant 1.000000e+00 : f32
      %54 = vector.broadcast %cst_27 : f32 to vector<2x8x128xf32>
      %55 = arith.subf %54, %36 : vector<2x8x128xf32>
      %cst_28 = arith.constant 5.000000e-01 : f32
      %56 = vector.broadcast %cst_28 : f32 to vector<2x8x128xf32>
      %57 = arith.mulf %56, %55 : vector<2x8x128xf32>
      %cst_29 = arith.constant 1.000000e+00 : f32
      %58 = vector.broadcast %cst_29 : f32 to vector<2x8x128xf32>
      %59 = arith.subf %58, %51 : vector<2x8x128xf32>
      %60 = math.log %59 : vector<2x8x128xf32>
      %61 = arith.mulf %57, %60 : vector<2x8x128xf32>
      %62 = arith.addf %53, %61 : vector<2x8x128xf32>
      %c0_30 = arith.constant 0 : index
      %c0_31 = arith.constant 0 : index
      %63 = vector.load %arg7[%c0_30, %c0_31] : memref<8x128xf32, #tpu.memory_space<vmem>>, vector<8x128xf32>
      %cst_32 = arith.constant 0.000000e+00 : f32
      %64 = vector.broadcast %cst_32 : f32 to vector<2x8x128xf32>
      %65 = arith.select %37, %62, %64 : vector<2x8x128xi1>, vector<2x8x128xf32>
      %cst_33 = arith.constant dense<0.000000e+00> : vector<8x128xf32>
      %66 = vector.multi_reduction <add>, %65, %cst_33 [0] : vector<2x8x128xf32> to vector<8x128xf32>
      %67 = arith.addf %63, %66 : vector<8x128xf32>
      %c0_34 = arith.constant 0 : index
      %c0_35 = arith.constant 0 : index
      %68 = vector.load %arg7[%c0_34, %c0_35] : memref<8x128xf32, #tpu.memory_space<vmem>>, vector<8x128xf32>
      tpu.vector_store %arg7[%c0_34, %c0_35], %67 {strides = array<i32>} : memref<8x128xf32, #tpu.memory_space<vmem>>, vector<8x128xf32>,
      %c1_i32_36 = arith.constant 1 : i32
    } else {
    }
    %c0_i32_5 = arith.constant 0 : i32
    %13 = arith.cmpi eq, %arg1, %c0_i32_5 : i32
    %14 = arith.extui %13 : i1 to i32
    %c0_i32_6 = arith.constant 0 : i32
    %15 = arith.cmpi ne, %14, %c0_i32_6 : i32
    scf.if %15 {
      %c0 = arith.constant 0 : index
      %c0_7 = arith.constant 0 : index
      %16 = vector.load %arg5[%c0, %c0_7] : memref<8x128xf32, #tpu.memory_space<vmem>>, vector<8x128xf32>
      %c0_8 = arith.constant 0 : index
      %c0_9 = arith.constant 0 : index
      %c0_10 = arith.constant 0 : index
      %c0_11 = arith.constant 0 : index
      %17 = vector.load %arg4[%c0_8, %c0_9, %c0_10, %c0_11] : memref<1x3x8x128xf32, #tpu.memory_space<vmem>>, vector<1x1x8x128xf32>
      %18 = vector.shape_cast %17 : vector<1x1x8x128xf32> to vector<8x128xf32>
      %19 = vector.shape_cast %16 : vector<8x128xf32> to vector<1x1x8x128xf32>
      tpu.vector_store %arg4[%c0_8, %c0_9, %c0_10, %c0_11], %19 {strides = array<i32>} : memref<1x3x8x128xf32, #tpu.memory_space<vmem>>, vector<1x1x8x128xf32>,
      %c0_12 = arith.constant 0 : index
      %c0_13 = arith.constant 0 : index
      %20 = vector.load %arg6[%c0_12, %c0_13] : memref<8x128xf32, #tpu.memory_space<vmem>>, vector<8x128xf32>
      %c0_14 = arith.constant 0 : index
      %c1 = arith.constant 1 : index
      %c0_15 = arith.constant 0 : index
      %c0_16 = arith.constant 0 : index
      %21 = vector.load %arg4[%c0_14, %c1, %c0_15, %c0_16] : memref<1x3x8x128xf32, #tpu.memory_space<vmem>>, vector<1x1x8x128xf32>
      %22 = vector.shape_cast %21 : vector<1x1x8x128xf32> to vector<8x128xf32>
      %23 = vector.shape_cast %20 : vector<8x128xf32> to vector<1x1x8x128xf32>
      tpu.vector_store %arg4[%c0_14, %c1, %c0_15, %c0_16], %23 {strides = array<i32>} : memref<1x3x8x128xf32, #tpu.memory_space<vmem>>, vector<1x1x8x128xf32>,
      %c0_17 = arith.constant 0 : index
      %c0_18 = arith.constant 0 : index
      %24 = vector.load %arg7[%c0_17, %c0_18] : memref<8x128xf32, #tpu.memory_space<vmem>>, vector<8x128xf32>
      %c0_19 = arith.constant 0 : index
      %c2 = arith.constant 2 : index
      %c0_20 = arith.constant 0 : index
      %c0_21 = arith.constant 0 : index
      %25 = vector.load %arg4[%c0_19, %c2, %c0_20, %c0_21] : memref<1x3x8x128xf32, #tpu.memory_space<vmem>>, vector<1x1x8x128xf32>
      %26 = vector.shape_cast %25 : vector<1x1x8x128xf32> to vector<8x128xf32>
      %27 = vector.shape_cast %24 : vector<8x128xf32> to vector<1x1x8x128xf32>
      tpu.vector_store %arg4[%c0_19, %c2, %c0_20, %c0_21], %27 {strides = array<i32>} : memref<1x3x8x128xf32, #tpu.memory_space<vmem>>, vector<1x1x8x128xf32>,
    } else {
    }
    return
  }
  func.func @transform_0(%arg0: i32, %arg1: i32) -> (i32, i32) {
    %c1_i32 = arith.constant 1 : i32
    %0 = arith.muli %arg0, %c1_i32 : i32
    %1 = arith.addi %0, %arg1 : i32
    %c0_i32 = arith.constant 0 : i32
    %c0_i32_0 = arith.constant 0 : i32
    return %1, %c0_i32 : i32, i32
  }
  func.func @transform_1(%arg0: i32, %arg1: i32) -> (i32, i32) {
    %c1_i32 = arith.constant 1 : i32
    %0 = arith.muli %arg0, %c1_i32 : i32
    %1 = arith.addi %0, %arg1 : i32
    %c0_i32 = arith.constant 0 : i32
    %c0_i32_0 = arith.constant 0 : i32
    return %1, %c0_i32 : i32, i32
  }
  func.func @transform_2(%arg0: i32, %arg1: i32) -> (i32, i32, i32, i32) {
    %c0_i32 = arith.constant 0 : i32
    %c0_i32_0 = arith.constant 0 : i32
    %c0_i32_1 = arith.constant 0 : i32
    %c0_i32_2 = arith.constant 0 : i32
    return %arg0, %c0_i32, %c0_i32_0, %c0_i32_1 : i32, i32, i32, i32
  }
}

</mosaic_0001>

<bundles_post_ra>
// kernel: tpu_custom_call.1
= control target key start
LH: loop header
LB: loop body
LE: loop exit
PB: predicated region body
PF: predicated region fallthrough
CT: control target
= control target key end

     0   :  { %7 = vsyncpa [#allocation6], 0  ;;  %s1009_s0 = inlined_call_operand.hbm [shape: f32[16,128], index: 0, kind: input, shape index: {}]   ;;  %s1010_s1 = inlined_call_operand.hbm [shape: f32[16,128], index: 1, kind: input, shape index: {}]   ;;  %s1011_s2 = inlined_call_operand.hbm [shape: f32[2,3,8,128], index: 2, kind: output, shape index: {}]  }
   0x1   :  { %9 = vsyncpa [#allocation6 + $0x1], 0 }
   0x2   :  { %10 = vsyncpa [#allocation9], 0 }
   0x3   :  { %12 = vsyncpa [#allocation9 + $0x1], 0 }
   0x4   :  { %13 = vsyncpa [#allocation7], 0 }
   0x5   :  { %15 = vsyncpa [#allocation7 + $0x1], 0  ;;  %s758_s9 = smov 0   ;;  %s760_s10 = smov 0  }
   0x6   :  { %s762_s11 = smov 0   ;;  %s764_s12 = smov 0  }
   0x7   :  { %s766_s13 = smov 0   ;;  %s768_s14 = smov 0  }
   0x8 LB: > { %s477_s15 = sadd.s32 4294967295, %s733_s14   ;;  %s478_s16 = sadd.s32 4294967294, %s733_s14   ;;  %s733_s14 = sphi %s768_s14, %s21_s14   ;;  %s729_s13 = sphi %s766_s13, %s1027_s13   ;;  %s725_s12 = sphi %s764_s12, %s1026_s12   ;;  %s721_s11 = sphi %s762_s11, %s1025_s11   ;;  %s717_s10 = sphi %s760_s10, %s1024_s10   ;;  %s713_s9 = sphi %s758_s9, %s1023_s9  }
   0x9   : > { %s33_s17 = sadd.s32 1, %s729_s13  ;;  %s42_s18 = sadd.s32 1, %s721_s11 }
   0xa   : > { %p35_p0 = scmp.ge.s32.totalorder %s33_s17, 2  ;;  %p49_p1 = scmp.ne.s32.totalorder %s721_s11, %s717_s10 }
   0xb   : > { %p50_p2 = scmp.eq.s32.totalorder %s733_s14, 0  ;;  %p55_p3 = scmp.ne.s32.totalorder %s717_s10, %s713_s9 }
   0xc   : > { %s1029_s17 = smov (%p35_p0, %s33_s17), 0  ;;  %p56_p5 = scmp.eq.s32.totalorder %s477_s15, 0 }
   0xd   : > { %p799_p4 = por %p50_p2, %p49_p1  ;;  %s39_s20 = ssub.s32 %s729_s13, %s1029_s17 }
   0xe   : > { %p107_p6 = scmp.eq.s32.totalorder %s477_s15, 1  ;;  %p40_p7 = scmp.eq.s32.totalorder %s39_s20, 0 }
   0xf   : > { %p805_p8 = por %p56_p5, %p55_p3  ;;  %p113_p10 = scmp.eq.s32.totalorder %s478_s16, 1 }
  0x10   : > { %p809_p9 = por %p107_p6, %p49_p1  ;;  %p522_p13 = scmp.lt.s32.totalorder %s733_s14, 2 }
  0x11   : > { %s814_s23 = scalar_select %p40_p7, %s721_s11, %s42_s18  }
  0x12   : > { %s1015_s22 = scalar_select %p809_p9, 1, 0 }
  0x13   : > { %p816_p11 = por %p113_p10, %p55_p3  ;;  %s823_s25 = sand.u32 1, %s721_s11  }
  0x14   : > { %s481_s26 = sshll.u32 %s823_s25, 4  ;;  %s499_s27 = sshll.u32 %s729_s13, 8 }
  0x15   : > { %s1016_s24 = scalar_select %p816_p11, 1, 0 }
  0x16   : > { %s832_s30 = scalar_lea.hbm %s1009_s0, %s499_s27  ;;  %s137_s3 = scalar_lea.vmem [#allocation5], %s481_s26 }
  0x17   : > { %s145_s4 = sshll.u32 %s137_s3, 4  ;;  %p840_p0 = pnand %p522_p13, %p799_p4  ;;  %s836_s4 = int_to_ptr.vmem [resolvable:$true] %s145_s4 }
  0x18   : > { %s134_s6 = scalar_lea.sflag [#allocation6], %s823_s25  ;;  %s593_s7 = scalar_lea.hbm %s832_s30, 256 }
  0x19   : > { %p594_p2 = scmp.ne.s32.totalorder %s832_s30, %s593_s7  ;;  %p595_p3 = pneg %p840_p0 }
  0x1a   : > { %s598_s16 = scalar_lea.hbm %s1009_s0, 256 }
  0x1b   : > { %p596_p5 = pnand %p595_p3, %p594_p2  ;;  %p600_p4 = scmp.lt.s32.totalorder %s598_s16, %s593_s7 }
  0x1d   : > { %p597_p6 = pneg %p596_p5 }
  0x1f   : > { %p602_p7 = pnand %p600_p4, %p597_p6 }
  0x21   : > { %605 = shalt.err (!%p602_p7)
}
  0x22   : > { %s606_s18 = scalar_lea.vmem %s836_s4, 256  ;;  %s735_s19 = smov [#allocation5]  }
  0x23   : > { %p607_p10 = scmp.ne.s32.totalorder %s836_s4, %s606_s18  ;;  %s611_s20 = sshll.u32 %s735_s19, 4  ;;  %s612_s20 = int_to_ptr.vmem [resolvable:$false] %s611_s20 }
  0x24   : > { %s613_s28 = scalar_lea.vmem %s612_s20, 512  ;;  %p614_p2 = scmp.lt.s32.totalorder %s836_s4, %s612_s20 }
  0x25   : > { %p609_p13 = pnand %p607_p10, %p595_p3  ;;  %p615_p5 = scmp.lt.s32.totalorder %s613_s28, %s606_s18 }
  0x27   : > { %p610_p12 = pneg %p609_p13  ;;  %p616_p1 = por %p615_p5, %p614_p2 }
  0x29   : > { %p617_p11 = pnand %p616_p1, %p610_p12 }
  0x2b   : > { %620 = shalt.err (!%p617_p11)
}
  0x2c   : > { %s736_s29 = smov 128   ;;  %s737_s3 = smov 8  }
  0x2d   : > { %514 = dma.hbm_to_vmem [thread:$0]  (!%p840_p0), %s832_s30, 256, %s836_s4, %s134_s6, %s736_s29, %s736_s29, %s737_s3  }
  0x2e   : > { %p175_p12 = scmp.lt.s32.totalorder %s733_s14, 3  ;;  %s877_s15 = scalar_lea.hbm %s1010_s1, %s499_s27 }
  0x2f   : > { %p1018_p11 = scmp.ge.s32.totalorder %s733_s14, 1  ;;  %s159_s18 = scalar_lea.vmem [#allocation8], %s481_s26 }
  0x30   : > { %s167_s19 = sshll.u32 %s159_s18, 4  ;;  %s156_s20 = scalar_lea.sflag [#allocation9], %s823_s25  ;;  %s168_s19 = int_to_ptr.vmem [resolvable:$true] %s167_s19 }
  0x31   : > { %p881_p1 = pnand %p1018_p11, %p175_p12  ;;  %s621_s30 = scalar_lea.hbm %s877_s15, 256 }
  0x32   : > { %p622_p6 = scmp.ne.s32.totalorder %s877_s15, %s621_s30  ;;  %s626_s6 = scalar_lea.hbm %s1010_s1, 256 }
  0x33   : > { %p628_p10 = scmp.lt.s32.totalorder %s626_s6, %s621_s30 }
  0x34   : > { %p624_p4 = pnand %p622_p6, %p595_p3 }
  0x36   : > { %p625_p7 = pneg %p624_p4 }
  0x38   : > { %p630_p13 = pnand %p628_p10, %p625_p7 }
  0x3a   : > { %633 = shalt.err (!%p630_p13)
}
  0x3b   : > { %s634_s28 = scalar_lea.vmem %s168_s19, 256  ;;  %s738_s25 = smov [#allocation8]  }
  0x3c   : > { %p635_p2 = scmp.ne.s32.totalorder %s168_s19, %s634_s28  ;;  %s639_s26 = sshll.u32 %s738_s25, 4  ;;  %s640_s26 = int_to_ptr.vmem [resolvable:$false] %s639_s26 }
  0x3d   : > { %s641_s7 = scalar_lea.vmem %s640_s26, 512  ;;  %p642_p11 = scmp.lt.s32.totalorder %s168_s19, %s640_s26 }
  0x3e   : > { %p637_p5 = pnand %p635_p2, %p595_p3  ;;  %p643_p6 = scmp.lt.s32.totalorder %s641_s7, %s634_s28 }
  0x40   : > { %p638_p12 = pneg %p637_p5  ;;  %p644_p4 = por %p643_p6, %p642_p11 }
  0x42   : > { %p645_p9 = pnand %p644_p4, %p638_p12 }
  0x44   : > { %648 = shalt.err (!%p645_p9)
}
  0x45   : > { %517 = dma.hbm_to_vmem [thread:$0]  (!%p840_p0), %s877_s15, 256, %s168_s19, %s156_s20, %s736_s29, %s736_s29, %s737_s3  }
  0x46   : > { %179 = sbr.rel (%p881_p1) target bundleno = 194 (0xc2), region = 28  ;;  %s908_s8 = sand.u32 (!%p881_p1), 1, %s717_s10  }
  0x47   : > { %s488_s18 = sshll.u32 (!%p881_p1), %s908_s8, 4  ;;  %s182_s30 = scalar_lea.sflag (!%p881_p1), [#allocation6], %s908_s8 }
  0x48   : > { %s912_s27 = scalar_lea.vmem (!%p881_p1), [#allocation5], %s488_s18 }
  0x4b   : > { %700 = dma.done.wait (%p805_p8), %s182_s30, 256  }
  0x4c   : > { %702 = vsyncadd (%p805_p8), %s182_s30, 4294967040  ;;  %s191_s5 = scalar_lea.sflag [#allocation9], %s908_s8  ;;  %s919_s29 = scalar_lea.vmem [#allocation8], %s488_s18 }
  0x4d   : > { %704 = dma.done.wait (%p805_p8), %s191_s5, 256  }
  0x4e   : > { %706 = vsyncadd (%p805_p8), %s191_s5, 4294967040  ;;  %s503_s3 = smul.u32 24, %s908_s8  ;;  %s501_s15 = sshll.u32 %s725_s12, 4  ;;  %v739_v0 = vmov 0.0  }
  0x4f   : > { %228 = vst [vmem:[#allocation2] sm:$0xff] %v739_v0  ;;  %229 = vst [vmem:[#allocation3] sm:$0xff] %v739_v0  ;;  %s929_s16 = sadd.s32 16, %s501_s15 }
  0x50   : > { %230 = vst [vmem:[#allocation4] sm:$0xff] %v739_v0  ;;  %s931_s19 = scalar_lea.vmem [#allocation10], %s503_s3  ;;  %p491_p9 = scmp.gt.s32.totalorder %s929_s16, 16 }
  0x52   : > { %237 = sbr.rel (%p491_p9) target bundleno = 120 (0x78), region = 44 }
  0x57   : > { %v238_v1 = vld [vmem:[%s912_s27] sm:$0xff]  ;;  %v239_v2 = vld [vmem:[%s912_s27 + $0x8] sm:$0xff] }
  0x58   : > { %v240_v3 = vld [vmem:[%s919_s29] sm:$0xff]  ;;  %v241_v4 = vld [vmem:[%s919_s29 + $0x8] sm:$0xff]  ;;  %v254_v6 = vmax.f32 %v238_v1, 1e-07  ;;  %v255_v7 = vmax.f32 %v239_v2, 1e-07 }
  0x59   : > { %v243_v5 = vmul.f32 %v240_v3, %v238_v1  ;;  %v249_v8 = vadd.f32 %v240_v3, %v238_v1  ;;  %v244_v9 = vmul.f32 %v241_v4, %v239_v2  ;;  %v250_v10 = vadd.f32 %v241_v4, %v239_v2  ;;  %v242_v11 = vld [vmem:[#allocation2] sm:$0xff]  ;;  %v248_v14 = vld [vmem:[#allocation3] sm:$0xff]  ;;  %v278_v39 = vld [vmem:[#allocation4] sm:$0xff] }
  0x5a   : > { %v256_v12 = vmin.f32 %v254_v6, 0.9999999  ;;  %v257_v13 = vmin.f32 %v255_v7, 0.9999999  ;;  %v264_v21 = vsub.f32 1.0, %v240_v3  ;;  %v265_v22 = vsub.f32 1.0, %v241_v4 }
  0x5b   : > { %v245_v15 = vadd.f32 %v244_v9, %v243_v5  ;;  %v251_v16 = vadd.f32 %v250_v10, %v249_v8 }
  0x5c   : > { %577 = vlog2.f32 %v256_v12  ;;  %v268_v17 = vsub.f32 1.0, %v256_v12  ;;  %v269_v18 = vsub.f32 1.0, %v257_v13  ;;  %v266_v26 = vmul.f32 0.5, %v264_v21 }
  0x5d   : > { %v246_v19 = vadd.f32 %v245_v15, %v242_v11  ;;  %579 = vlog2.f32 %v257_v13  ;;  %v252_v20 = vadd.f32 %v251_v16, %v248_v14  ;;  %v267_v29 = vmul.f32 0.5, %v265_v22 }
  0x5e   : > { %581 = vlog2.f32 %v268_v17 }
  0x5f   : > { %247 = vst [vmem:[#allocation2] sm:$0xff] %v246_v19  ;;  %253 = vst [vmem:[#allocation3] sm:$0xff] %v252_v20  ;;  %583 = vlog2.f32 %v269_v18 }
  0x69   : > { %v578_v23 = vpop.eup %577 }
  0x6a   : > { %v580_v24 = vpop.eup %579  ;;  %v259_v25 = vmul.f32 0.6931472, %v578_v23 }
  0x6b   : > { %v582_v27 = vpop.eup %581  ;;  %v261_v28 = vmul.f32 0.6931472, %v580_v24 }
  0x6c   : > { %v584_v30 = vpop.eup %583  ;;  %v262_v31 = vmul.f32 %v259_v25, %v240_v3  ;;  %v271_v32 = vmul.f32 0.6931472, %v582_v27 }
  0x6d   : > { %v263_v33 = vmul.f32 %v261_v28, %v241_v4  ;;  %v273_v34 = vmul.f32 0.6931472, %v584_v30 }
  0x6e   : > { %v274_v35 = vmul.f32 %v271_v32, %v266_v26 }
  0x6f   : > { %v275_v36 = vmul.f32 %v273_v34, %v267_v29 }
  0x70   : > { %v276_v37 = vadd.f32 %v274_v35, %v262_v31 }
  0x71   : > { %v277_v38 = vadd.f32 %v275_v36, %v263_v33 }
  0x73   : > { %v279_v40 = vadd.f32 %v277_v38, %v276_v37 }
  0x75   : > { %v280_v41 = vadd.f32 %v279_v40, %v278_v39 }
  0x77   : > { %281 = vst [vmem:[#allocation4] sm:$0xff] %v280_v41 }
  0x78 PF: > { %p492_p8 = scmp.le.s32.totalorder %s929_s16, 16 }
  0x7a   : > { %285 = sbr.rel (%p492_p8) target bundleno = 169 (0xa9), region = 48 }
  0x7f   : > { %v292_v42 = vlaneseq  ;;  %v295_v43 = vstv %s501_s15  ;;  %v287_v45 = vld [vmem:[%s912_s27] sm:$0xff]  ;;  %v288_v49 = vld [vmem:[%s912_s27 + $0x8] sm:$0xff] }
  0x80   : > { %v289_v46 = vld [vmem:[%s919_s29] sm:$0xff]  ;;  %v290_v50 = vld [vmem:[%s919_s29 + $0x8] sm:$0xff] }
  0x81   : > { %v293_v44 = vshrl.u32 %v292_v42, 7  ;;  %v304_v63 = vld [vmem:[#allocation2] sm:$0xff]  ;;  %v310_v3 = vld [vmem:[#allocation3] sm:$0xff]  ;;  %v340_v27 = vld [vmem:[#allocation4] sm:$0xff] }
  0x83   : > { %v294_v47 = vadd.s32 8, %v293_v44  ;;  %v296_v48 = vadd.s32 %v295_v43, %v293_v44 }
  0x85   : > { %v297_v51 = vadd.s32 %v295_v43, %v294_v47  ;;  %vm298_vm0 = vcmp.lt.s32.totalorder %v296_v48, 16 }
  0x86   : > { %v300_v52 = vsel %vm298_vm0, %v287_v45, 0.0  ;;  %v302_v53 = vsel %vm298_vm0, %v289_v46, 0.0 }
  0x87   : > { %vm299_vm1 = vcmp.lt.s32.totalorder %v297_v51, 16  ;;  %v305_v54 = vmul.f32 %v302_v53, %v300_v52  ;;  %v316_v55 = vmax.f32 %v300_v52, 1e-07  ;;  %v311_v58 = vadd.f32 %v302_v53, %v300_v52 }
  0x88   : > { %v301_v56 = vsel %vm299_vm1, %v288_v49, 0.0  ;;  %v303_v57 = vsel %vm299_vm1, %v290_v50, 0.0  ;;  %v326_v8 = vsub.f32 1.0, %v302_v53 }
  0x89   : > { %v306_v59 = vmul.f32 %v303_v57, %v301_v56  ;;  %v317_v60 = vmax.f32 %v301_v56, 1e-07  ;;  %v318_v61 = vmin.f32 %v316_v55, 0.9999999  ;;  %v312_v62 = vadd.f32 %v303_v57, %v301_v56 }
  0x8a   : > { %v327_v9 = vsub.f32 1.0, %v303_v57  ;;  %v328_v13 = vmul.f32 0.5, %v326_v8 }
  0x8b   : > { %v307_v0 = vadd.f32 %v306_v59, %v305_v54  ;;  %v319_v1 = vmin.f32 %v317_v60, 0.9999999  ;;  %585 = vlog2.f32 %v318_v61  ;;  %v330_v2 = vsub.f32 1.0, %v318_v61 }
  0x8c   : > { %v313_v4 = vadd.f32 %v312_v62, %v311_v58  ;;  %v329_v16 = vmul.f32 0.5, %v327_v9 }
  0x8d   : > { %v308_v5 = vadd.f32 %v307_v0, %v304_v63  ;;  %587 = vlog2.f32 %v319_v1  ;;  %v331_v6 = vsub.f32 1.0, %v319_v1 }
  0x8e   : > { %589 = vlog2.f32 %v330_v2  ;;  %v314_v7 = vadd.f32 %v313_v4, %v310_v3 }
  0x8f   : > { %309 = vst [vmem:[#allocation2] sm:$0xff] %v308_v5  ;;  %591 = vlog2.f32 %v331_v6 }
  0x90   : > { %315 = vst [vmem:[#allocation3] sm:$0xff] %v314_v7 }
  0x98   : > { %v586_v10 = vpop.eup %585 }
  0x99   : > { %v321_v11 = vmul.f32 0.6931472, %v586_v10 }
  0x9a   : > { %v588_v12 = vpop.eup %587 }
  0x9b   : > { %v590_v14 = vpop.eup %589  ;;  %v323_v15 = vmul.f32 0.6931472, %v588_v12  ;;  %v324_v18 = vmul.f32 %v321_v11, %v302_v53 }
  0x9c   : > { %v592_v17 = vpop.eup %591  ;;  %v333_v19 = vmul.f32 0.6931472, %v590_v14 }
  0x9d   : > { %v325_v20 = vmul.f32 %v323_v15, %v303_v57  ;;  %v335_v21 = vmul.f32 0.6931472, %v592_v17 }
  0x9e   : > { %v336_v22 = vmul.f32 %v333_v19, %v328_v13 }
  0x9f   : > { %v337_v23 = vmul.f32 %v335_v21, %v329_v16 }
  0xa0   : > { %v338_v24 = vadd.f32 %v336_v22, %v324_v18 }
  0xa1   : > { %v339_v25 = vadd.f32 %v337_v23, %v325_v20 }
  0xa2   : > { %v341_v26 = vsel %vm298_vm0, %v338_v24, 0.0 }
  0xa3   : > { %v342_v28 = vsel %vm299_vm1, %v339_v25, 0.0 }
  0xa4   : > { %v343_v29 = vadd.f32 %v342_v28, %v341_v26 }
  0xa6   : > { %v344_v30 = vadd.f32 %v343_v29, %v340_v27 }
  0xa8   : > { %345 = vst [vmem:[#allocation4] sm:$0xff] %v344_v30 }
  0xa9 PF: > { %v349_v31 = vld [vmem:[#allocation2] sm:$0xff]  ;;  %v351_v32 = vld [vmem:[#allocation3] sm:$0xff]  ;;  %s504_s21 = smul.u32 384, %s725_s12  ;;  %s371_s20 = sshll.u32 %s931_s19, 4  ;;  %s961_s20 = int_to_ptr.vmem [resolvable:$true] %s371_s20 }
  0xaa   : > { %350 = vst [vmem:[%s931_s19] sm:$0xff] %v349_v31  ;;  %494 = vst [vmem:[%s931_s19 + $0x8] sm:$0xff] %v351_v32  ;;  %s358_s25 = scalar_lea.sflag [#allocation7], %s908_s8  ;;  %s649_s26 = scalar_lea.vmem %s961_s20, 384 }
  0xab   : > { %s959_s28 = scalar_lea.hbm %s1011_s2, %s504_s21  ;;  %p650_p0 = scmp.ne.s32.totalorder %s961_s20, %s649_s26 }
  0xac   : > { %p1020_p3 = scmp.ne.s32.totalorder %s1015_s22, 0  ;;  %s740_s12 = smov [#allocation10]  }
  0xad   : > { %s653_s7 = sshll.u32 %s740_s12, 4  ;;  %s654_s7 = int_to_ptr.vmem [resolvable:$false] %s653_s7 }
  0xae   : > { %p651_p1 = pnand %p650_p0, %p1020_p3  ;;  %s655_s18 = scalar_lea.vmem %s654_s7, 768 }
  0xaf   : > { %v354_v33 = vld [vmem:[#allocation4] sm:$0xff]  ;;  %p656_p10 = scmp.lt.s32.totalorder %s961_s20, %s654_s7  ;;  %p657_p13 = scmp.lt.s32.totalorder %s655_s18, %s649_s26 }
  0xb0   : > { %495 = vst [vmem:[%s931_s19 + $0x10] sm:$0xff] %v354_v33  ;;  %p652_p7 = pneg %p651_p1 }
  0xb1   : > { %p658_p2 = por %p657_p13, %p656_p10 }
  0xb3   : > { %p659_p5 = pnand %p658_p2, %p652_p7 }
  0xb5   : > { %662 = shalt.err (!%p659_p5)
}
  0xb6   : > { %s663_s30 = scalar_lea.hbm %s959_s28, 384  ;;  %s667_s29 = scalar_lea.hbm %s1011_s2, 768 }
  0xb7   : > { %p664_p12 = scmp.ne.s32.totalorder %s959_s28, %s663_s30  ;;  %p668_p4 = scmp.lt.s32.totalorder %s959_s28, %s1011_s2 }
  0xb8   : > { %p669_p9 = scmp.lt.s32.totalorder %s667_s29, %s663_s30 }
  0xb9   : > { %p665_p11 = pnand %p664_p12, %p1020_p3 }
  0xba   : > { %p670_p8 = por %p669_p9, %p668_p4 }
  0xbb   : > { %p666_p6 = pneg %p665_p11 }
  0xbd   : > { %p671_p0 = pnand %p670_p8, %p666_p6 }
  0xbf   : > { %674 = shalt.err (!%p671_p0)
}
  0xc0   : > { %s741_s16 = smov 128   ;;  %s742_s19 = smov 8  }
  0xc1   : > { %509 = dma.vmem_to_hbm [thread:$0]  (%p1020_p3), %s961_s20, 384, %s959_s28, %s358_s25, %s741_s16, %s741_s16, %s742_s19  }
  0xc2 PF: > { %s386_s21 = sand.u32 1, %s713_s9   ;;  %p1021_p1 = scmp.ne.s32.totalorder %s1016_s24, 0 }
  0xc3   : > { %p1022_p7 = scmp.ge.s32.totalorder %s733_s14, 2  ;;  %s387_s4 = scalar_lea.sflag [#allocation7], %s386_s21 }
  0xc5   : > { %p519_p10 = pnand %p1022_p7, %p1021_p1 }
  0xc7   : > { %p520_p13 = pneg %p519_p10 }
  0xc9   : > { %708 = dma.done.wait (%p520_p13), %s387_s4, 384  }
  0xca   : > { %710 = vsyncadd (%p520_p13), %s387_s4, 4294966912  ;;  %s21_s14 = sadd.s32 1, %s733_s14   ;;  %s1023_s9 = smov %s717_s10 }
  0xcb   : > { %p18_p2 = scmp.ge.s32.totalorder %s21_s14, 4   ;;  %s1024_s10 = smov %s721_s11 }
  0xcc   : > { %s1025_s11 = smov %s814_s23  ;;  %s1026_s12 = smov %s729_s13 }
  0xcd   : > { %s1027_s13 = smov %s1029_s17  ;;  %20 = sbr.rel (!%p18_p2) target bundleno = 8 (0x8), region = 104 }
  0xd2   :  { %392 = vsyncpa [#allocation6], 1 }
  0xd3   :  { %394 = vsyncpa [#allocation6 + $0x1], 1 }
  0xd4   :  { %395 = vsyncpa [#allocation9], 1 }
  0xd5   :  { %397 = vsyncpa [#allocation9 + $0x1], 1 }
  0xd6   :  { %398 = vsyncpa [#allocation7], 1 }
  0xd7   :  { %400 = vsyncpa [#allocation7 + $0x1], 1 }

</bundles_post_ra>
